<compile_context>
chip_gen: v6e
topology: v6e:2x2x1
jax: 0.10.0
libtpu: 0.0.40
codegen_flags: <defaults>
</compile_context>

<pallas_src>
import functools

import jax
import jax.numpy as jnp
from jax import lax
from jax.experimental import pallas as pl
from jax.experimental.pallas import tpu as pltpu


def _round_up(v, m):
    return -(-v // m) * m


_VMEM_LIMIT_BYTES = 48 * 1024 * 1024   # safe on v5e/v6e (128 MiB phys) and v7x (64 MiB)
_TARGET_TILE_BYTES = 4 * 1024 * 1024   # per input tile; 2*(in+out) ~ 16 MiB double-buffered


def _inorm_residual_kernel(x_ref, o_ref, *, eps, hw_valid, hw_padded):
    # x_ref / o_ref: (block_rows, hw_padded) tile in VMEM.
    x = x_ref[...].astype(jnp.float32)
    inv_hw = jnp.float32(1.0 / hw_valid)
    # Padded lanes are zero, so the plain sum still gives the correct mean.
    mean = jnp.sum(x, axis=-1, keepdims=True) * inv_hw
    centered = x - mean
    if hw_padded != hw_valid:
        # Exclude padded lanes from the variance (they would contribute mean^2).
        lane = lax.broadcasted_iota(jnp.int32, x.shape, dimension=1)
        centered_msk = jnp.where(lane < hw_valid, centered, 0.0)
    else:
        centered_msk = centered
    var = jnp.sum(centered_msk * centered_msk, axis=-1, keepdims=True) * inv_hw
    inv_std = lax.rsqrt(var + eps)
    # residual: x + instance_norm(x); padded rows/lanes produce junk that is
    # sliced off by the wrapper.
    o_ref[...] = (x + centered * inv_std).astype(o_ref.dtype)


@functools.partial(jax.jit, static_argnames=("eps",))
def residual_block_forward(x, *, eps=1e-5):
    """x: (N, C, H, W) -> x + InstanceNorm2d(C)(x), same shape and dtype."""
    N, C, H, W = x.shape
    R, HW = N * C, H * W
    itemsize = x.dtype.itemsize

    # Lane-dense output: pad spatial axis to a multiple of 128 so stores are
    # unmasked full-lane vst (biggest measured single lever for mem-bound ops).
    HW_pad = _round_up(HW, 128)

    # Tile sizing: a few MiB per input tile, multiple of 8 rows, >= 2 grid
    # steps when there are enough rows (v7x has 2 TensorCores per chip).
    rows_total = _round_up(R, 8)
    block_rows = max(8, (_TARGET_TILE_BYTES // (HW_pad * itemsize)) // 8 * 8)
    block_rows = min(block_rows, rows_total)
    if rows_total < 2 * block_rows and rows_total >= 16:
        block_rows = max(8, (rows_total // 2) // 8 * 8)
    # TODO(synk): for very large H*W (multi-100K elems per instance) switch to
    # a two-axis split reduction (accumulate sum / sum-sq over spatial chunks)
    # instead of letting a single 8-row tile blow past VMEM.

    R_pad = _round_up(R, block_rows)
    grid = R_pad // block_rows

    x2 = x.reshape(R, HW)
    if (R_pad, HW_pad) != (R, HW):
        x2 = jnp.pad(x2, ((0, R_pad - R), (0, HW_pad - HW)))

    kernel = functools.partial(
        _inorm_residual_kernel, eps=eps, hw_valid=HW, hw_padded=HW_pad)

    out2 = pl.pallas_call(
        kernel,
        out_shape=jax.ShapeDtypeStruct((R_pad, HW_pad), x.dtype),
        grid_spec=pltpu.PrefetchScalarGridSpec(
            num_scalar_prefetch=0,
            grid=(grid,),
            in_specs=[pl.BlockSpec((block_rows, HW_pad), lambda i: (i, 0))],
            out_specs=pl.BlockSpec((block_rows, HW_pad), lambda i: (i, 0)),
        ),
        input_output_aliases={0: 0},  # output overwrites the staged input buffer
        compiler_params=pltpu.CompilerParams(
            dimension_semantics=("parallel",),
            vmem_limit_bytes=_VMEM_LIMIT_BYTES),
    )(x2)

    return out2[:R, :HW].reshape(N, C, H, W)


def _reference(x, eps=1e-5):
    xf = x.astype(jnp.float32)
    mean = jnp.mean(xf, axis=(2, 3), keepdims=True)
    var = jnp.mean((xf - mean) ** 2, axis=(2, 3), keepdims=True)
    return (xf + (xf - mean) / jnp.sqrt(var + eps)).astype(x.dtype)


if __name__ == "__main__":
    key = jax.random.PRNGKey(0)
    k_x, k_x2, k_w1, k_w2 = jax.random.split(key, 4)

    # Primary case: the module's natural small shape.
    input_dim = output_dim = 4
    N, H, W = 2, 16, 16
    x = jax.random.normal(k_x, (N, input_dim, H, W), dtype=jnp.float32)

    # Module parameters (deterministic init). Unused by the forward output
    # because every intermediate `o` is overwritten before the final line.
    conv_general_w = jax.random.normal(k_w1, (output_dim, input_dim, 3, 3),
                                       dtype=jnp.float32) * 0.1
    conv_w = jax.random.normal(k_w2, (output_dim, output_dim, 3, 3),
                               dtype=jnp.float32) * 0.1

    out = jax.block_until_ready(residual_block_forward(x))
    ref = _reference(x)
    assert out.shape == x.shape and out.dtype == x.dtype
    assert jnp.allclose(out, ref, atol=1e-5, rtol=1e-5), "mismatch vs reference"

    # Secondary case: exercises lane padding (H*W not a multiple of 128),
    # row padding and a >=2-step grid.
    xb = jax.random.normal(k_x2, (2, 16, 24, 20), dtype=jnp.float32)
    outb = jax.block_until_ready(residual_block_forward(xb))
    refb = _reference(xb)
    assert outb.shape == xb.shape and outb.dtype == xb.dtype
    assert jnp.allclose(outb, refb, atol=1e-5, rtol=1e-5), "mismatch (padded case)"

    print("KERNEL_OK")
</pallas_src>

<mosaic_0001>
module attributes {stable_mosaic.version = 11 : i64} {
  func.func @_inorm_residual_kernel(%arg0: i32, %arg1: memref<8x256xf32, #tpu.memory_space<vmem>>, %arg2: memref<8x256xf32, #tpu.memory_space<vmem>>) attributes {dimension_semantics = [#tpu.dimension_semantics<parallel>], iteration_bounds = array<i64: 1>, scalar_prefetch = 0 : i64, scratch_operands = 0 : i64, tpu.core_type = #tpu.core_type<tc>, window_params = [{transform_indices = @transform_0, window_bounds = array<i64: 8, 256>}, {transform_indices = @transform_1, window_bounds = array<i64: 8, 256>}]} {
    %c0 = arith.constant 0 : index
    %c0_0 = arith.constant 0 : index
    %0 = vector.load %arg1[%c0, %c0_0] : memref<8x256xf32, #tpu.memory_space<vmem>>, vector<8x256xf32>
    %cst = arith.constant dense<0.000000e+00> : vector<8xf32>
    %1 = vector.multi_reduction <add>, %0, %cst [1] : vector<8x256xf32> to vector<8xf32>
    %2 = vector.shape_cast %1 : vector<8xf32> to vector<8x1xf32>
    %cst_1 = arith.constant 3.906250e-03 : f32
    %3 = vector.broadcast %cst_1 : f32 to vector<8x1xf32>
    %4 = arith.mulf %2, %3 : vector<8x1xf32>
    %5 = vector.broadcast %4 : vector<8x1xf32> to vector<8x256xf32>
    %6 = arith.subf %0, %5 : vector<8x256xf32>
    %7 = arith.mulf %6, %6 : vector<8x256xf32>
    %cst_2 = arith.constant dense<0.000000e+00> : vector<8xf32>
    %8 = vector.multi_reduction <add>, %7, %cst_2 [1] : vector<8x256xf32> to vector<8xf32>
    %9 = vector.shape_cast %8 : vector<8xf32> to vector<8x1xf32>
    %cst_3 = arith.constant 3.906250e-03 : f32
    %10 = vector.broadcast %cst_3 : f32 to vector<8x1xf32>
    %11 = arith.mulf %9, %10 : vector<8x1xf32>
    %cst_4 = arith.constant 9.99999974E-6 : f32
    %12 = vector.broadcast %cst_4 : f32 to vector<8x1xf32>
    %13 = arith.addf %11, %12 : vector<8x1xf32>
    %14 = math.rsqrt %13 : vector<8x1xf32>
    %15 = vector.broadcast %14 : vector<8x1xf32> to vector<8x256xf32>
    %16 = arith.mulf %6, %15 : vector<8x256xf32>
    %17 = arith.addf %0, %16 : vector<8x256xf32>
    %c0_5 = arith.constant 0 : index
    %c0_6 = arith.constant 0 : index
    %18 = vector.load %arg2[%c0_5, %c0_6] : memref<8x256xf32, #tpu.memory_space<vmem>>, vector<8x256xf32>
    tpu.vector_store %arg2[%c0_5, %c0_6], %17 {strides = array<i32>} : memref<8x256xf32, #tpu.memory_space<vmem>>, vector<8x256xf32>,
    return
  }
  func.func @transform_0(%arg0: i32) -> (i32, i32) {
    %c0_i32 = arith.constant 0 : i32
    %c0_i32_0 = arith.constant 0 : i32
    return %arg0, %c0_i32 : i32, i32
  }
  func.func @transform_1(%arg0: i32) -> (i32, i32) {
    %c0_i32 = arith.constant 0 : i32
    %c0_i32_0 = arith.constant 0 : i32
    return %arg0, %c0_i32 : i32, i32
  }
}

</mosaic_0001>

<bundles_post_ra>
// kernel: residual_block_forward.1
= control target key start
LH: loop header
LB: loop body
LE: loop exit
PB: predicated region body
PF: predicated region fallthrough
CT: control target
= control target key end

     0   :  { %s58_s0 = inlined_call_operand.vmem [shape: f32[8,256], index: 0, kind: input, shape index: {}, may-alias: {0,1}]   ;;  %s59_s1 = inlined_call_operand.vmem [shape: f32[8,256], index: 1, kind: output, shape index: {}, may-alias: {0,1}]  }
   0x1   :  { %v8_v0 = vld [vmem:[%s58_s0] sm:$0xff]  ;;  %v9_v1 = vld [vmem:[%s58_s0 + $0x8] sm:$0xff] }
   0x2   :  { %v10_v2 = vadd.f32 %v9_v1, %v8_v0 }
   0x4   :  { %11 = vadd.xlane.f32.xlu0 %v10_v2 }
  0x8d   :  { %v12_v3 = vpop.xlane.xlu0 %11 }
  0x8e   :  { %v13_v4 = vmul.f32 0.00390625, %v12_v3 }
  0x90   :  { %v14_v5 = vsub.f32 %v8_v0, %v13_v4  ;;  %v15_v6 = vsub.f32 %v9_v1, %v13_v4 }
  0x92   :  { %v16_v7 = vmul.f32 %v14_v5, %v14_v5  ;;  %v17_v8 = vmul.f32 %v15_v6, %v15_v6 }
  0x94   :  { %v18_v9 = vadd.f32 %v17_v8, %v16_v7 }
  0x96   :  { %19 = vadd.xlane.f32.xlu0 %v18_v9 }
 0x11f   :  { %v20_v10 = vpop.xlane.xlu0 %19 }
 0x120   :  { %v21_v11 = vmul.f32 0.00390625, %v20_v10 }
 0x122   :  { %v22_v12 = vadd.f32 1e-05, %v21_v11 }
 0x124   :  { %34 = vrsqrt.f32 %v22_v12 }
 0x131   :  { %v35_v13 = vpop.eup %34 }
 0x132   :  { %v24_v14 = vmul.f32 %v35_v13, %v14_v5  ;;  %v25_v15 = vmul.f32 %v35_v13, %v15_v6 }
 0x134   :  { %v26_v16 = vadd.f32 %v24_v14, %v8_v0  ;;  %v27_v17 = vadd.f32 %v25_v15, %v9_v1 }
 0x136   :  { %28 = vst [vmem:[%s59_s1] sm:$0xff] %v26_v16  ;;  %29 = vst [vmem:[%s59_s1 + $0x8] sm:$0xff] %v27_v17 }

</bundles_post_ra>
